<compile_context>
chip_gen: v7x
topology: tpu7x:2x2x1
jax: 0.10.0
libtpu: 0.0.40
codegen_flags: <defaults>
</compile_context>

<pallas_src>
import functools

import jax
import jax.numpy as jnp
from jax.experimental import pallas as pl
from jax.experimental.pallas import tpu as pltpu

DECAY = 0.9999
_LANE = 128
_EMA_LANES = 1024          # lane-dense last dim (large multiple of 128)
_EMA_ROW_TILE = 512        # 2 MiB per f32 buffer; ~12 MiB total double-buffered
_FWD_MAX_TILE_ROWS = 2048  # cap on spatial rows per forward tile


def _round_up(x, m):
    return (x + m - 1) // m * m


# ---------------------------------------------------------------------------
# Pallas kernels
# ---------------------------------------------------------------------------
def _conv_pool_head_kernel(p_ref, cw_ref, cb_ref, fw_ref, fb_ref, o_ref, *,
                           spt, hw, inv_hw):
    """Fused conv(im2col matmul)+bias+ReLU -> per-sample avg-pool -> head.

    One grid step handles `spt` whole samples (tm = spt*hw rows of the flat
    M = N*H*W axis), so there is no cross-step reduction state.
    """
    # Conv as matmul: bf16 operands, f32 MXU accumulation. K = 36 (logical,
    # unpadded) is masked by the compiler; no HBM pad traffic.
    y = jnp.dot(p_ref[...], cw_ref[...], preferred_element_type=jnp.float32)
    y = jnp.maximum(y + cb_ref[...], 0.0)                     # bias + ReLU

    # Per-sample global average pool + f32 linear head, single-row stores.
    for s in range(spt):                                      # static unroll
        pooled = jnp.sum(y[s * hw:(s + 1) * hw, :], axis=0,
                         keepdims=True) * inv_hw              # (1, COUT_PAD)
        pooled8 = jnp.broadcast_to(pooled, (8, pooled.shape[-1]))
        logits8 = jnp.dot(pooled8, fw_ref[...],
                          preferred_element_type=jnp.float32)
        o_ref[pl.ds(s, 1), :] = logits8[0:1, :] + fb_ref[...]


def _ema_blend_kernel(e_ref, m_ref, o_ref, *, decay):
    # EMA master state is f32; model side may be any dtype (upcast in-kernel).
    e = e_ref[...]
    m = m_ref[...].astype(jnp.float32)
    o_ref[...] = decay * e + (1.0 - decay) * m


# ---------------------------------------------------------------------------
# Forward wrapper: fused conv + pool + linear
# ---------------------------------------------------------------------------
def ema_model_forward(x_nchw, params, *, compute_dtype=jnp.bfloat16):
    N, C, H, W = x_nchw.shape
    conv_w, conv_b = params["conv_w"], params["conv_b"]
    fc_w, fc_b = params["fc_w"], params["fc_b"]
    Cout, Nout = conv_w.shape[0], fc_w.shape[0]
    HW, M, K = H * W, N * H * W, C * 9

    COUT_PAD = _round_up(Cout, _LANE)
    NOUT_PAD = _round_up(Nout, _LANE)

    # im2col in (kh, kw, cin) order at K=36 -- NOT padded to 128 in HBM.
    # TODO(synk): generate the 3x3 patches in-kernel from a resident NHWC row
    # tile (+1-row halo) to also remove the remaining 9x tap duplication.
    x_nhwc = jnp.transpose(x_nchw, (0, 2, 3, 1))
    xp = jnp.pad(x_nhwc, ((0, 0), (1, 1), (1, 1), (0, 0)))
    cols = jnp.stack(
        [xp[:, dh:dh + H, dw:dw + W, :] for dh in range(3) for dw in range(3)],
        axis=3,
    )                                                           # [N, H, W, 9, C]
    patches = cols.reshape(M, K).astype(compute_dtype)          # [M, 36] bf16

    # Conv weight: (Cout, Cin, 3, 3) -> [(kh,kw,cin), Cout_pad], bf16.
    wc = jnp.transpose(conv_w, (2, 3, 1, 0)).reshape(K, Cout)
    wc = jnp.pad(wc, ((0, 0), (0, COUT_PAD - Cout))).astype(compute_dtype)
    bc = jnp.pad(conv_b.astype(jnp.float32), (0, COUT_PAD - Cout)).reshape(1, COUT_PAD)
    # Head weights/bias stay f32 (tiny; better accuracy, trivial MXU cost).
    wf = jnp.pad(fc_w.T.astype(jnp.float32),
                 ((0, COUT_PAD - Cout), (0, NOUT_PAD - Nout)))
    bf = jnp.pad(fc_b.astype(jnp.float32), (0, NOUT_PAD - Nout)).reshape(1, NOUT_PAD)

    # Row tile spans whole samples: tm = spt * HW rows of the flat M axis.
    spt_cap = max(1, _FWD_MAX_TILE_ROWS // HW)
    if spt_cap >= N:
        spt = N
    else:
        cands = [d for d in range(8, spt_cap + 1, 8) if N % d == 0]
        spt = max(cands) if cands else N
    tm = spt * HW
    if tm != M and tm % 8 != 0:
        spt, tm = N, M      # fall back to a single full block (keeps specs legal)
    nblk = N // spt

    kern = functools.partial(_conv_pool_head_kernel,
                             spt=spt, hw=HW, inv_hw=1.0 / HW)
    out = pl.pallas_call(
        kern,
        out_shape=jax.ShapeDtypeStruct((N, NOUT_PAD), jnp.float32),
        grid=(nblk,),
        in_specs=[
            pl.BlockSpec((tm, K), lambda i: (i, 0)),            # patches tile
            pl.BlockSpec((K, COUT_PAD), lambda i: (0, 0)),      # conv weight
            pl.BlockSpec((1, COUT_PAD), lambda i: (0, 0)),      # conv bias
            pl.BlockSpec((COUT_PAD, NOUT_PAD), lambda i: (0, 0)),  # head weight
            pl.BlockSpec((1, NOUT_PAD), lambda i: (0, 0)),      # head bias
        ],
        out_specs=pl.BlockSpec((spt, NOUT_PAD), lambda i: (i, 0)),
        compiler_params=pltpu.CompilerParams(
            dimension_semantics=("parallel",),
            vmem_limit_bytes=32 * 1024 * 1024,
        ),
        cost_estimate=pl.CostEstimate(
            flops=2 * M * K * COUT_PAD + 2 * N * 8 * COUT_PAD * NOUT_PAD,
            transcendentals=0,
            bytes_accessed=int(patches.size) * 2 + int(wc.size) * 2
                           + int(wf.size) * 4 + N * NOUT_PAD * 4,
        ),
    )(patches, wc, bc, wf, bf)
    return out[:, :Nout].astype(x_nchw.dtype)


# ---------------------------------------------------------------------------
# EMA update: one fused, tiled, in-place kernel over the packed f32 state
# ---------------------------------------------------------------------------
def _ema_update_packed(e_packed, m_packed, decay):
    rows = e_packed.shape[0]
    row_tile = min(rows, _EMA_ROW_TILE)
    grid = (pl.cdiv(rows, row_tile),)            # remainder block handled by Pallas
    return pl.pallas_call(
        functools.partial(_ema_blend_kernel, decay=decay),
        out_shape=jax.ShapeDtypeStruct(e_packed.shape, jnp.float32),
        grid=grid,
        in_specs=[
            pl.BlockSpec((row_tile, _EMA_LANES), lambda i: (i, 0)),
            pl.BlockSpec((row_tile, _EMA_LANES), lambda i: (i, 0)),
        ],
        out_specs=pl.BlockSpec((row_tile, _EMA_LANES), lambda i: (i, 0)),
        input_output_aliases={0: 0},             # blend into the persistent state
        compiler_params=pltpu.CompilerParams(
            dimension_semantics=("parallel",),
            vmem_limit_bytes=32 * 1024 * 1024,   # >= 6-buffer footprint on v5e too
        ),
        cost_estimate=pl.CostEstimate(
            flops=3 * rows * _EMA_LANES,
            transcendentals=0,
            bytes_accessed=rows * _EMA_LANES * (4 + m_packed.dtype.itemsize + 4),
        ),
    )(e_packed, m_packed)


# ---------------------------------------------------------------------------
# ModelEMA equivalent
# ---------------------------------------------------------------------------
class ModelEMA:
    """JAX/Pallas analogue of the PyTorch ModelEMA wrapper."""

    def __init__(self, params, decay=0.9999):
        params = {k: jnp.asarray(v) for k, v in params.items()}
        self.decay = float(decay)
        self._keys = list(params.keys())
        self._shapes = {k: params[k].shape for k in self._keys}
        self._dtypes = {k: params[k].dtype for k in self._keys}
        self._sizes = {k: int(params[k].size) for k in self._keys}
        self._total = sum(self._sizes.values())
        self._rows = _round_up(pl.cdiv(self._total, _EMA_LANES), 8)

        # f32 master EMA state, packed lane-dense ONCE and kept in this layout
        # (bf16 params would quantize away a 1e-4-scale update otherwise).
        self._packed = self._pack(params, jnp.float32)
        self._cache = dict(params)               # deepcopy-at-construction view
        self._update_fn = self._build_update_fn()
        self._forward_fn = jax.jit(ema_model_forward)
        # NOTE: the toy wrapped module has no buffers; per the PyTorch spec,
        # buffers would be copied verbatim (not EMA-blended).

    # -- packing helpers (off the per-step hot path for the EMA side) --------
    def _pack(self, params, dtype=None):
        vals = [params[k].reshape(-1) for k in self._keys]
        if dtype is None:
            dtype = jnp.result_type(*[v.dtype for v in vals])
        flat = jnp.concatenate([v.astype(dtype) for v in vals])
        flat = jnp.pad(flat, (0, self._rows * _EMA_LANES - self._total))
        return flat.reshape(self._rows, _EMA_LANES)

    def _unpack(self):
        flat = self._packed.reshape(-1)
        out, off = {}, 0
        for k in self._keys:
            sz = self._sizes[k]
            out[k] = flat[off:off + sz].reshape(self._shapes[k]).astype(self._dtypes[k])
            off += sz
        return out

    def _build_update_fn(self):
        keys, total, rows, decay = self._keys, self._total, self._rows, self.decay

        def update(e_packed, model_params):
            # Pack the live-model side only, in its own storage dtype
            # (the kernel upcasts to f32 for the blend).
            vals = [model_params[k].reshape(-1) for k in keys]
            dt = jnp.result_type(*[v.dtype for v in vals])
            m_flat = jnp.concatenate([v.astype(dt) for v in vals])
            m_packed = jnp.pad(
                m_flat, (0, rows * _EMA_LANES - total)).reshape(rows, _EMA_LANES)
            return _ema_update_packed(e_packed, m_packed, decay)

        return jax.jit(update, donate_argnums=(0,))

    # -- public API -----------------------------------------------------------
    def update_parameters(self, model_params):
        model_params = {k: jnp.asarray(model_params[k]) for k in self._keys}
        self._packed = self._update_fn(self._packed, model_params)
        self._cache = None       # per-key view rebuilt lazily (off the hot path)

    @property
    def params(self):
        if self._cache is None:
            self._cache = self._unpack()
        return self._cache

    def __call__(self, x):
        # forward(input) -> self.module(input): conv+relu -> pool -> linear.
        return self._forward_fn(x, self.params)

    def state_dict(self):
        return dict(self.params)

    def load_state_dict(self, state_dict):
        params = {k: jnp.asarray(state_dict[k]) for k in self._keys}
        self._packed = self._pack(params, jnp.float32)
        self._cache = params


# ---------------------------------------------------------------------------
# Plain-JAX references (sanity checks)
# ---------------------------------------------------------------------------
def _reference_forward(x, p):
    y = jax.lax.conv_general_dilated(
        x, p["conv_w"], window_strides=(1, 1), padding="SAME",
        dimension_numbers=("NCHW", "OIHW", "NCHW"),
    ) + p["conv_b"].reshape(1, -1, 1, 1)
    y = jnp.maximum(y, 0.0)
    pooled = jnp.mean(y, axis=(2, 3))                 # [N, Cout]
    return pooled @ p["fc_w"].T + p["fc_b"]


def _reference_ema(e, m, decay):
    return decay * e + (1.0 - decay) * m


if __name__ == "__main__":
    key = jax.random.PRNGKey(0)
    k_x, k_cw, k_cb, k_fw, k_fb, k_d = jax.random.split(key, 6)

    N, Cin, H, W = 2, 4, 16, 16
    Cout, Nout = 8, 10

    x = jax.random.normal(k_x, (N, Cin, H, W), dtype=jnp.float32)

    model_params = {
        "conv_w": 0.1 * jax.random.normal(k_cw, (Cout, Cin, 3, 3), jnp.float32),
        "conv_b": 0.1 * jax.random.normal(k_cb, (Cout,), jnp.float32),
        "fc_w":   0.1 * jax.random.normal(k_fw, (Nout, Cout), jnp.float32),
        "fc_b":   0.1 * jax.random.normal(k_fb, (Nout,), jnp.float32),
    }

    # ModelEMA deep-copies the model at construction time.
    ema = ModelEMA(model_params, decay=DECAY)

    # Simulate one training step on the live model, then EMA-update (Pallas).
    stepped_params = {
        k: v + 0.01 * jax.random.normal(jax.random.fold_in(k_d, i), v.shape, v.dtype)
        for i, (k, v) in enumerate(model_params.items())
    }
    ema.update_parameters(stepped_params)

    # Check the EMA blend matches the reference update (pure f32 math).
    for k in model_params:
        ref_p = _reference_ema(model_params[k], stepped_params[k], DECAY)
        assert jnp.allclose(ema.params[k], ref_p, rtol=1e-6, atol=1e-6), k

    # ModelEMA.forward(input) == EMA copy of the module applied to the input.
    out = ema(x)
    out = jax.block_until_ready(out)
    assert out.shape == (N, Nout) and out.dtype == jnp.float32

    # Sanity check against a plain-JAX f32 reference (conv matmul uses bf16
    # operands with f32 accumulation, so allow a small tolerance).
    ref = _reference_forward(x, ema.params)
    assert jnp.allclose(out, ref, rtol=3e-2, atol=3e-2)

    print("KERNEL_OK")
</pallas_src>

<mosaic_0001>
module attributes {stable_mosaic.version = 11 : i64} {
  func.func @_ema_blend_kernel(%arg0: i32, %arg1: memref<8x1024xf32, #tpu.memory_space<vmem>>, %arg2: memref<8x1024xf32, #tpu.memory_space<vmem>>, %arg3: memref<8x1024xf32, #tpu.memory_space<vmem>>) attributes {dimension_semantics = [#tpu.dimension_semantics<parallel>], iteration_bounds = array<i64: 1>, scalar_prefetch = 0 : i64, scratch_operands = 0 : i64, tpu.core_type = #tpu.core_type<tc>, window_params = [{transform_indices = @transform_0, window_bounds = array<i64: 8, 1024>}, {transform_indices = @transform_1, window_bounds = array<i64: 8, 1024>}, {transform_indices = @transform_2, window_bounds = array<i64: 8, 1024>}]} {
    %c0 = arith.constant 0 : index
    %c0_0 = arith.constant 0 : index
    %0 = vector.load %arg1[%c0, %c0_0] : memref<8x1024xf32, #tpu.memory_space<vmem>>, vector<8x1024xf32>
    %c0_1 = arith.constant 0 : index
    %c0_2 = arith.constant 0 : index
    %1 = vector.load %arg2[%c0_1, %c0_2] : memref<8x1024xf32, #tpu.memory_space<vmem>>, vector<8x1024xf32>
    %cst = arith.constant 0.999899983 : f32
    %2 = vector.broadcast %cst : f32 to vector<8x1024xf32>
    %3 = arith.mulf %2, %0 : vector<8x1024xf32>
    %cst_3 = arith.constant 9.99999974E-5 : f32
    %4 = vector.broadcast %cst_3 : f32 to vector<8x1024xf32>
    %5 = arith.mulf %4, %1 : vector<8x1024xf32>
    %6 = arith.addf %3, %5 : vector<8x1024xf32>
    %c0_4 = arith.constant 0 : index
    %c0_5 = arith.constant 0 : index
    %7 = vector.load %arg3[%c0_4, %c0_5] : memref<8x1024xf32, #tpu.memory_space<vmem>>, vector<8x1024xf32>
    tpu.vector_store %arg3[%c0_4, %c0_5], %6 {strides = array<i32>} : memref<8x1024xf32, #tpu.memory_space<vmem>>, vector<8x1024xf32>,
    return
  }
  func.func @transform_0(%arg0: i32) -> (i32, i32) {
    %c0_i32 = arith.constant 0 : i32
    %c0_i32_0 = arith.constant 0 : i32
    return %arg0, %c0_i32 : i32, i32
  }
  func.func @transform_1(%arg0: i32) -> (i32, i32) {
    %c0_i32 = arith.constant 0 : i32
    %c0_i32_0 = arith.constant 0 : i32
    return %arg0, %c0_i32 : i32, i32
  }
  func.func @transform_2(%arg0: i32) -> (i32, i32) {
    %c0_i32 = arith.constant 0 : i32
    %c0_i32_0 = arith.constant 0 : i32
    return %arg0, %c0_i32 : i32, i32
  }
}

</mosaic_0001>

<bundles_post_ra>
// kernel: update.1
= control target key start
LH: loop header
LB: loop body
LE: loop exit
PB: predicated region body
PF: predicated region fallthrough
CT: control target
= control target key end

     0   :  { %7 = vsyncpa [#allocation3], 0  ;;  %s202_s0 = inlined_call_operand.hbm [shape: f32[8,1024], index: 0, kind: input, shape index: {}, may-alias: {0,2}]   ;;  %s203_s1 = inlined_call_operand.vmem [shape: f32[8,1024], index: 1, kind: input, shape index: {}]   ;;  %s204_s2 = inlined_call_operand.hbm [shape: f32[8,1024], index: 2, kind: output, shape index: {}, may-alias: {0,2}]  }
   0x1   :  { %8 = vsyncpa [#allocation4], 0  ;;  %s137_s9 = smov [#allocation2]   ;;  %s89_s13 = scalar_lea.hbm %s202_s0, 1024 }
   0x2   :  { %s15_s10 = sshll.u32 %s137_s9, 4  ;;  %p90_p0 = scmp.ne.s32.totalorder %s202_s0, %s89_s13  ;;  %s16_s10 = int_to_ptr.vmem [resolvable:$true] %s15_s10 }
   0x3   :  { %p93_p1 = scmp.lt.u32.totalorder %s89_s13, %s202_s0 }
   0x5   :  { %p95_p2 = pnand %p93_p1, %p90_p0 }
   0x7   :  { %98 = shalt.err (!%p95_p2)
}
   0x8   :  { %s99_s18 = scalar_lea.vmem %s16_s10, 1024  ;;  %p104_p4 = scmp.lt.s32.totalorder %s16_s10, %s16_s10 }
   0x9   :  { %p100_p3 = scmp.ne.s32.totalorder %s16_s10, %s99_s18  ;;  %p105_p5 = scmp.lt.s32.totalorder %s99_s18, %s99_s18 }
   0xb   :  { %p106_p6 = por %p105_p5, %p104_p4 }
   0xd   :  { %p107_p7 = pnand %p106_p6, %p100_p3 }
   0xf   :  { %110 = shalt.err (!%p107_p7)
}
  0x10   :  { %18 = dma.hbm_to_vmem [thread:$0]  %s202_s0, 1024, %s16_s10, [#allocation3]  }
  0x11   :  { %133 = dma.done.wait [#allocation3], 1024  }
  0x12   :  { %134 = vsyncadd [#allocation3], 4294966272  ;;  %v24_v0 = vld [vmem:[#allocation2] sm:$0xff]  ;;  %v25_v2 = vld [vmem:[#allocation2 + $0x8] sm:$0xff]  ;;  %s138_s8 = smov [#allocation5]  }
  0x13   :  { %v32_v1 = vld [vmem:[%s203_s1] sm:$0xff]  ;;  %v40_v3 = vmul.f32 0.9999, %v24_v0  ;;  %v33_v5 = vld [vmem:[%s203_s1 + $0x8] sm:$0xff]  ;;  %v26_v6 = vld [vmem:[#allocation2 + $0x10] sm:$0xff]  ;;  %s78_s9 = sshll.u32 %s138_s8, 4  ;;  %s79_s9 = int_to_ptr.vmem [resolvable:$true] %s78_s9 }
  0x14   :  { %v48_v4 = vmul.f32 0.0001, %v32_v1  ;;  %v41_v7 = vmul.f32 0.9999, %v25_v2  ;;  %v49_v8 = vmul.f32 0.0001, %v33_v5  ;;  %p116_p9 = scmp.lt.s32.totalorder %s79_s9, %s79_s9 }
  0x15   :  { %v34_v9 = vld [vmem:[%s203_s1 + $0x10] sm:$0xff]  ;;  %v27_v10 = vld [vmem:[#allocation2 + $0x18] sm:$0xff]  ;;  %v42_v12 = vmul.f32 0.9999, %v26_v6  ;;  %v28_v15 = vld [vmem:[#allocation2 + $0x20] sm:$0xff]  ;;  %s111_s10 = scalar_lea.vmem %s79_s9, 1024 }
  0x16   :  { %v56_v11 = vadd.f32 %v48_v4, %v40_v3  ;;  %v50_v13 = vmul.f32 0.0001, %v34_v9  ;;  %v35_v14 = vld [vmem:[%s203_s1 + $0x18] sm:$0xff]  ;;  %v57_v16 = vadd.f32 %v49_v8, %v41_v7  ;;  %v43_v17 = vmul.f32 0.9999, %v27_v10  ;;  %v36_v19 = vld [vmem:[%s203_s1 + $0x20] sm:$0xff]  ;;  %p112_p8 = scmp.ne.s32.totalorder %s79_s9, %s111_s10  ;;  %p117_p10 = scmp.lt.s32.totalorder %s111_s10, %s111_s10 }
  0x17   :  { %v51_v18 = vmul.f32 0.0001, %v35_v14  ;;  %v29_v20 = vld [vmem:[#allocation2 + $0x28] sm:$0xff]  ;;  %v44_v22 = vmul.f32 0.9999, %v28_v15  ;;  %v30_v25 = vld [vmem:[#allocation2 + $0x30] sm:$0xff] }
  0x18   :  { %64 = vst [vmem:[#allocation5] sm:$0xff] %v56_v11  ;;  %v58_v21 = vadd.f32 %v50_v13, %v42_v12  ;;  %v52_v23 = vmul.f32 0.0001, %v36_v19  ;;  %v37_v24 = vld [vmem:[%s203_s1 + $0x28] sm:$0xff]  ;;  %65 = vst [vmem:[#allocation5 + $0x8] sm:$0xff] %v57_v16  ;;  %v38_v29 = vld [vmem:[%s203_s1 + $0x30] sm:$0xff]  ;;  %p118_p11 = por %p117_p10, %p116_p9 }
  0x19   :  { %v59_v26 = vadd.f32 %v51_v18, %v43_v17  ;;  %v45_v27 = vmul.f32 0.9999, %v29_v20  ;;  %v53_v28 = vmul.f32 0.0001, %v37_v24  ;;  %v31_v30 = vld [vmem:[#allocation2 + $0x38] sm:$0xff] }
  0x1a   :  { %66 = vst [vmem:[#allocation5 + $0x10] sm:$0xff] %v58_v21  ;;  %v60_v31 = vadd.f32 %v52_v23, %v44_v22  ;;  %v46_v32 = vmul.f32 0.9999, %v30_v25  ;;  %v54_v33 = vmul.f32 0.0001, %v38_v29  ;;  %v39_v34 = vld [vmem:[%s203_s1 + $0x38] sm:$0xff]  ;;  %p119_p12 = pnand %p118_p11, %p112_p8 }
  0x1b   :  { %67 = vst [vmem:[#allocation5 + $0x18] sm:$0xff] %v59_v26  ;;  %v61_v35 = vadd.f32 %v53_v28, %v45_v27  ;;  %v47_v36 = vmul.f32 0.9999, %v31_v30  ;;  %v55_v37 = vmul.f32 0.0001, %v39_v34 }
  0x1c   :  { %68 = vst [vmem:[#allocation5 + $0x20] sm:$0xff] %v60_v31  ;;  %v62_v38 = vadd.f32 %v54_v33, %v46_v32 }
  0x1d   :  { %69 = vst [vmem:[#allocation5 + $0x28] sm:$0xff] %v61_v35  ;;  %v63_v39 = vadd.f32 %v55_v37, %v47_v36 }
  0x1e   :  { %70 = vst [vmem:[#allocation5 + $0x30] sm:$0xff] %v62_v38 }
  0x1f   :  { %71 = vst [vmem:[#allocation5 + $0x38] sm:$0xff] %v63_v39 }
  0x20   :  { %122 = shalt.err (!%p119_p12)
}
  0x21   :  { %s123_s12 = scalar_lea.hbm %s204_s2, 1024 }
  0x22   :  { %p124_p13 = scmp.ne.s32.totalorder %s204_s2, %s123_s12  ;;  %p127_p0 = scmp.lt.u32.totalorder %s123_s12, %s204_s2 }
  0x24   :  { %p129_p1 = pnand %p127_p0, %p124_p13 }
  0x26   :  { %132 = shalt.err (!%p129_p1)
}
  0x27   :  { %81 = dma.vmem_to_hbm [thread:$0]  %s79_s9, 1024, %s204_s2, [#allocation4]  }
  0x28   :  { %135 = dma.done.wait [#allocation4], 1024  }
  0x29   :  { %136 = vsyncadd [#allocation4], 4294966272 }
  0x2a   :  { %85 = vsyncpa [#allocation3], 1 }
  0x2b   :  { %86 = vsyncpa [#allocation4], 1 }

</bundles_post_ra>
